<compile_context>
chip_gen: v7x
topology: tpu7x:2x2x1
jax: 0.10.0
libtpu: 0.0.40
codegen_flags: <defaults>
</compile_context>

<pallas_src>
import functools

import jax
import jax.numpy as jnp
from jax.experimental import pallas as pl
from jax.experimental.pallas import tpu as pltpu


# ----------------------------------------------------------------------------
# Fused kernel: entire forward, single invocation (no grid; toy shapes fit VMEM).
# ----------------------------------------------------------------------------
def _fused_forward_kernel(*refs, n_layers, k_hops, bs, fins, hidden, lap_dtype):
    """refs layout (inputs..., output):
      [0]  x_fm      (bs*F0, N)   feature-major input (batch folded on sublanes)
      [1]  lhat      (N, N)       scaled Laplacian, lap_dtype (bf16 in prod)
      [2+l] w_t_l    (K, H, Fin)  transposed Cheb weights, per layer (l < L)
      [2+L+0] bias   (L*H, 1)     all layer biases, column layout
      [2+L+1] wfc    (L, H)       fc weight re-indexed: wfc[l, h] = fc_w[h*L+l]
      [2+L+2] P_t    (N, n_cmt)   transposed scatter_mean pooling matrix
      [2+L+3] w1     (n_cmt, Hfc)
      [2+L+4] b1_eff (1, Hfc)     lin1 bias with fc bias folded in
      [2+L+5] w2     (Hfc, C)
      [2+L+6] b2     (1, C)
      [-1] out       (bs, C)      log-probs
    """
    x_ref, lhat_ref = refs[0], refs[1]
    w_refs = refs[2:2 + n_layers]
    (bias_ref, wfc_ref, pt_ref, w1_ref, b1_ref, w2_ref, b2_ref) = \
        refs[2 + n_layers:9 + n_layers]
    o_ref = refs[-1]

    lhat = lhat_ref[...]                              # loaded once
    h = x_ref[...]                                    # (bs*Fin, N), f32
    fc_acc = [None] * bs                              # per-batch (1, N) fc accum

    for l in range(n_layers):
        fin = fins[l]
        w_ref = w_refs[l]                             # (K, H, fin)
        b_col = bias_ref[l * hidden:(l + 1) * hidden, :]   # (H, 1)
        wfc_row = wfc_ref[l:l + 1, :]                       # (1, H)

        # Chebyshev basis for the whole batch, lane-dense in N (lhat symmetric):
        #   T0 = h, T1 = h @ lhat, Tk = 2 (T_{k-1} @ lhat) - T_{k-2}
        # dot inputs are cast to lap_dtype; recurrence / accumulation stay f32.
        ts = [h]
        if k_hops > 1:
            ts.append(jnp.dot(h.astype(lap_dtype), lhat,
                              preferred_element_type=jnp.float32))
            for _ in range(2, k_hops):
                ts.append(2.0 * jnp.dot(ts[-1].astype(lap_dtype), lhat,
                                        preferred_element_type=jnp.float32)
                          - ts[-2])

        # Per-batch weight application: accumulate the K per-hop matmuls
        # (no kron(I_bs, W), no lane-axis concat of the T_k).
        new_rows = []
        for b in range(bs):
            out_b = None
            for k in range(k_hops):
                t_kb = ts[k][b * fin:(b + 1) * fin, :]        # (fin, N)
                c = jnp.dot(w_ref[k], t_kb,
                            preferred_element_type=jnp.float32)   # (H, N)
                out_b = c if out_b is None else out_b + c
            out_b = jnp.maximum(out_b + b_col, 0.0)            # bias + ReLU
            new_rows.append(out_b)
            # Distribute fc (Linear(H*L, 1)) over layers: acc_b += <out_l, wfc_l>
            fc_c = jnp.dot(wfc_row, out_b,
                           preferred_element_type=jnp.float32)     # (1, N)
            fc_acc[b] = fc_c if fc_acc[b] is None else fc_acc[b] + fc_c
        h = jnp.concatenate(new_rows, axis=0)                  # (bs*H, N)

    acc = jnp.concatenate(fc_acc, axis=0)                      # (bs, N)

    # scatter_mean pooling as matmul; fc bias already folded into b1_eff.
    s = jnp.dot(acc, pt_ref[...], preferred_element_type=jnp.float32)  # (bs, n_cmt)

    # TODO(synk): F.dropout skipped — eval mode (training=False) makes it identity.
    h1 = jnp.maximum(
        jnp.dot(s, w1_ref[...], preferred_element_type=jnp.float32) + b1_ref[...],
        0.0)                                                   # (bs, Hfc)
    logits = jnp.dot(h1, w2_ref[...],
                     preferred_element_type=jnp.float32) + b2_ref[...]  # (bs, C)

    # log_softmax over classes (lanes).
    m = jnp.max(logits, axis=-1, keepdims=True)
    z = logits - m
    lse = jnp.log(jnp.sum(jnp.exp(z), axis=-1, keepdims=True))
    o_ref[...] = z - lse                                       # single (bs, C) store


# ----------------------------------------------------------------------------
# Host-side weight prep — hoisted, run ONCE per weight set (not per forward).
# ----------------------------------------------------------------------------
def prepare_params(lhat, cheb_params, P, wfc, bfc, w1, b1, w2, b2,
                   *, lap_dtype=jnp.bfloat16):
    f32 = jnp.float32
    L = len(cheb_params)
    K = cheb_params[0][0].shape[0]
    H = cheb_params[0][0].shape[2]
    Hfc = w1.shape[1]
    C = w2.shape[1]
    n_cmt = P.shape[0]

    # Transposed Cheb weights (K, Hout, Fin) for the feature-major orientation.
    w_t = [jnp.transpose(w.astype(f32), (0, 2, 1)) for (w, _) in cheb_params]
    # Pack all layer biases into one column operand.
    bias_col = jnp.concatenate(
        [b.astype(f32).reshape(H, 1) for (_, b) in cheb_params], axis=0)  # (L*H, 1)
    # torch 'cat' feature ordering is h*L + l -> per-layer row table.
    wfc_rows = jnp.transpose(wfc.astype(f32).reshape(H, L))               # (L, H)
    w1f = w1.astype(f32)
    # Fold fc bias into lin1's bias: (s + bfc) @ w1 + b1 == s @ w1 + b1_eff.
    b1_eff = (b1.astype(f32)
              + jnp.asarray(bfc, f32) * jnp.sum(w1f, axis=0)).reshape(1, Hfc)

    arrays = dict(
        lhat=lhat.astype(lap_dtype),
        w_t=w_t,
        bias_col=bias_col,
        wfc_rows=wfc_rows,
        P_t=jnp.transpose(P.astype(f32)),          # (N, n_cmt)
        w1=w1f,
        b1_eff=b1_eff,
        w2=w2.astype(f32),
        b2_row=b2.astype(f32).reshape(1, C),
    )
    meta = dict(n_layers=L, k_hops=K, hidden=H, lap_dtype=lap_dtype,
                fins=tuple(w.shape[1] for (w, _) in cheb_params),
                n_cmt=n_cmt, hidden_fc=Hfc, n_classes=C)
    return arrays, meta


# ----------------------------------------------------------------------------
# Forward: x layout fold + single pallas_call.
# ----------------------------------------------------------------------------
def cheb_model_forward(x, arrays, meta):
    f32 = jnp.float32
    bs, N, F0 = x.shape
    L, K, H = meta["n_layers"], meta["k_hops"], meta["hidden"]
    fins = meta["fins"]
    n_cmt, Hfc, C = meta["n_cmt"], meta["hidden_fc"], meta["n_classes"]

    # Feature-major, batch folded on sublanes: x_fm[b*F0 + f, n] = x[b, n, f].
    x_fm = jnp.transpose(x.astype(f32), (0, 2, 1)).reshape(bs * F0, N)

    inputs = [x_fm, arrays["lhat"], *arrays["w_t"],
              arrays["bias_col"], arrays["wfc_rows"], arrays["P_t"],
              arrays["w1"], arrays["b1_eff"], arrays["w2"], arrays["b2_row"]]

    # Dense flop count (no kron zero-work).
    flops = 0
    for l in range(L):
        fin = fins[l]
        flops += 2 * (bs * fin) * N * N * (K - 1)     # Laplacian matmuls
        flops += 2 * bs * K * H * fin * N             # Cheb weight matmuls
        flops += 2 * bs * H * N                       # fc distribution
    flops += 2 * bs * N * n_cmt + 2 * bs * n_cmt * Hfc + 2 * bs * Hfc * C
    bytes_accessed = (sum(int(a.size) * a.dtype.itemsize for a in inputs)
                      + 4 * bs * C)
    cost = pl.CostEstimate(flops=flops, transcendentals=bs * (C + 1),
                           bytes_accessed=bytes_accessed)

    kernel = functools.partial(
        _fused_forward_kernel, n_layers=L, k_hops=K, bs=bs, fins=fins,
        hidden=H, lap_dtype=meta["lap_dtype"])
    out = pl.pallas_call(
        kernel,
        out_shape=jax.ShapeDtypeStruct((bs, C), f32),
        in_specs=[pl.BlockSpec(memory_space=pltpu.MemorySpace.VMEM)] * len(inputs),
        out_specs=pl.BlockSpec(memory_space=pltpu.MemorySpace.VMEM),
        cost_estimate=cost,
    )(*inputs)
    return out                                         # (bs, C)


# ----------------------------------------------------------------------------
# Pure-JAX reference for correctness check (torch semantics, 'cat' ordering).
# ----------------------------------------------------------------------------
def reference_forward(x, lhat, cheb_params, P, wfc, bfc, w1, b1, w2, b2):
    def cheb(h, w, b):
        K = w.shape[0]
        t_prev = h
        out = jnp.einsum('bnf,fo->bno', t_prev, w[0])
        if K > 1:
            t_cur = jnp.einsum('ij,bjf->bif', lhat, h)
            out = out + jnp.einsum('bnf,fo->bno', t_cur, w[1])
            for k in range(2, K):
                t_next = 2.0 * jnp.einsum('ij,bjf->bif', lhat, t_cur) - t_prev
                out = out + jnp.einsum('bnf,fo->bno', t_next, w[k])
                t_prev, t_cur = t_cur, t_next
        return jax.nn.relu(out + b)

    xs = []
    h = x
    for (w, b) in cheb_params:
        h = cheb(h, w, b)
        xs.append(h)
    bs, N, H = xs[0].shape
    xcat = jnp.stack(xs, axis=-1).reshape(bs, N, H * len(xs))   # index = h*L + l
    pooled = jnp.einsum('cn,bnf->bcf', P, xcat)                 # (bs, n_cmt, HL)
    s = jnp.einsum('bcf,f->bc', pooled, wfc) + bfc              # fc -> (bs, n_cmt)
    hfc = jax.nn.relu(s @ w1 + b1)
    logits = hfc @ w2 + b2
    return jax.nn.log_softmax(logits, axis=-1)


# ----------------------------------------------------------------------------
if __name__ == "__main__":
    # Small, self-consistent shapes
    bs = 2
    num_nodes = 16          # "genes"
    n_features = 4
    hidden_gcn = 8
    num_layers = 3          # conv1 + 2 extra convs
    hidden_fc = 16
    n_cmt = 6               # pathways
    n_classes = 3
    k_hops = 2

    key = jax.random.PRNGKey(0)

    def init_linear(k, fan_in, fan_out):
        k1, k2 = jax.random.split(k)
        scale = 1.0 / jnp.sqrt(jnp.float32(fan_in))
        w = jax.random.uniform(k1, (fan_in, fan_out), jnp.float32, -scale, scale)
        b = jax.random.uniform(k2, (fan_out,), jnp.float32, -scale, scale)
        return w, b

    # --- graph: ring over num_nodes, symmetric edges, sym-norm Laplacian -----
    A = jnp.zeros((num_nodes, num_nodes), jnp.float32)
    idx = jnp.arange(num_nodes)
    A = A.at[idx, (idx + 1) % num_nodes].set(1.0)
    A = A.at[(idx + 1) % num_nodes, idx].set(1.0)
    deg = A.sum(axis=1)
    dinv = 1.0 / jnp.sqrt(jnp.maximum(deg, 1.0))
    A_norm = dinv[:, None] * A * dinv[None, :]
    lhat = -A_norm                                  # lambda_max = 2.0 default

    # --- pathway (row, col) membership -> dense mean-pooling matrix P --------
    # NOTE: denom clamps empty pathways to 1.0; torch_scatter's scatter_mean on
    # an empty pathway yields 0/nan — pathways are assumed non-empty here.
    row = jnp.concatenate([idx, idx])
    col = jnp.concatenate([idx % n_cmt, (idx + 3) % n_cmt])
    M = jnp.zeros((n_cmt, num_nodes), jnp.float32).at[col, row].add(1.0)
    denom = jnp.maximum(M.sum(axis=1, keepdims=True), 1.0)
    P = M / denom                                   # scatter_mean as matmul

    # --- parameters (deterministic) ------------------------------------------
    keys = jax.random.split(key, 16)
    cheb_params = []
    fin = n_features
    for li in range(num_layers):
        kw, kb = jax.random.split(keys[li])
        scale = 1.0 / jnp.sqrt(jnp.float32(fin * k_hops))
        w = jax.random.uniform(kw, (k_hops, fin, hidden_gcn), jnp.float32,
                               -scale, scale)
        b = jax.random.uniform(kb, (hidden_gcn,), jnp.float32, -scale, scale)
        cheb_params.append((w, b))
        fin = hidden_gcn

    HL = num_layers * hidden_gcn
    wfc_m, bfc_v = init_linear(keys[8], HL, 1)       # fc: Linear(HL, 1)
    wfc = wfc_m[:, 0]
    bfc = bfc_v[0]
    w1, b1 = init_linear(keys[9], n_cmt, hidden_fc)  # lin1
    w2, b2 = init_linear(keys[10], hidden_fc, n_classes)  # lin2

    # --- input ---------------------------------------------------------------
    x = jax.random.normal(keys[11], (bs, num_nodes, n_features), jnp.float32)

    ref = reference_forward(x, lhat, cheb_params, P, wfc, bfc, w1, b1, w2, b2)
    ref = jax.block_until_ready(ref)

    # Exactness check: full-f32 path, tight tolerance.
    arrays32, meta32 = prepare_params(lhat, cheb_params, P, wfc, bfc,
                                      w1, b1, w2, b2, lap_dtype=jnp.float32)
    out32 = jax.block_until_ready(cheb_model_forward(x, arrays32, meta32))
    assert out32.shape == (bs, n_classes)
    assert jnp.allclose(out32, ref, atol=1e-4, rtol=1e-4), (out32, ref)

    # Production path: bf16 Laplacian stream, f32 accumulation, loose tolerance.
    arrays16, meta16 = prepare_params(lhat, cheb_params, P, wfc, bfc,
                                      w1, b1, w2, b2, lap_dtype=jnp.bfloat16)
    out16 = jax.block_until_ready(cheb_model_forward(x, arrays16, meta16))
    assert out16.shape == (bs, n_classes)
    assert jnp.allclose(out16, ref, atol=5e-2, rtol=5e-2), (out16, ref)

    print("KERNEL_OK")
</pallas_src>

<mosaic_0001>
module attributes {stable_mosaic.version = 11 : i64} {
  func.func @_fused_forward_kernel(%arg0: memref<8x16xf32, #tpu.memory_space<vmem>>, %arg1: memref<16x16xf32, #tpu.memory_space<vmem>>, %arg2: memref<2x8x4xf32, #tpu.memory_space<vmem>>, %arg3: memref<2x8x8xf32, #tpu.memory_space<vmem>>, %arg4: memref<2x8x8xf32, #tpu.memory_space<vmem>>, %arg5: memref<24x1xf32, #tpu.memory_space<vmem>>, %arg6: memref<3x8xf32, #tpu.memory_space<vmem>>, %arg7: memref<16x6xf32, #tpu.memory_space<vmem>>, %arg8: memref<6x16xf32, #tpu.memory_space<vmem>>, %arg9: memref<1x16xf32, #tpu.memory_space<vmem>>, %arg10: memref<16x3xf32, #tpu.memory_space<vmem>>, %arg11: memref<1x3xf32, #tpu.memory_space<vmem>>, %arg12: memref<2x3xf32, #tpu.memory_space<vmem>>) attributes {dimension_semantics = [], scalar_prefetch = 0 : i64, scratch_operands = 0 : i64, tpu.core_type = #tpu.core_type<tc>} {
    %c0 = arith.constant 0 : index
    %c0_0 = arith.constant 0 : index
    %0 = vector.load %arg1[%c0, %c0_0] : memref<16x16xf32, #tpu.memory_space<vmem>>, vector<16x16xf32>
    %c0_1 = arith.constant 0 : index
    %c0_2 = arith.constant 0 : index
    %1 = vector.load %arg0[%c0_1, %c0_2] : memref<8x16xf32, #tpu.memory_space<vmem>>, vector<8x16xf32>
    %c0_3 = arith.constant 0 : index
    %c0_4 = arith.constant 0 : index
    %2 = vector.load %arg5[%c0_3, %c0_4] : memref<24x1xf32, #tpu.memory_space<vmem>>, vector<8x1xf32>
    %c0_5 = arith.constant 0 : index
    %c0_6 = arith.constant 0 : index
    %3 = vector.load %arg6[%c0_5, %c0_6] : memref<3x8xf32, #tpu.memory_space<vmem>>, vector<1x8xf32>
    %cst = arith.constant dense<0.000000e+00> : vector<8x16xf32>
    %4 = tpu.matmul %1, %0, %cst {dimension_numbers = #tpu.dot_dimension_numbers<[1], [0], [0], [1], [0, 0, 1, 1], [], []>} : vector<8x16xf32>, vector<16x16xf32>, vector<8x16xf32> -> vector<8x16xf32>
    %5 = vector.extract_strided_slice %1 {offsets = [0, 0], sizes = [4, 16], strides = [1, 1]} : vector<8x16xf32> to vector<4x16xf32>
    %c0_7 = arith.constant 0 : index
    %c0_8 = arith.constant 0 : index
    %c0_9 = arith.constant 0 : index
    %6 = vector.load %arg2[%c0_7, %c0_8, %c0_9] : memref<2x8x4xf32, #tpu.memory_space<vmem>>, vector<1x8x4xf32>
    %7 = vector.shape_cast %6 : vector<1x8x4xf32> to vector<8x4xf32>
    %cst_10 = arith.constant dense<0.000000e+00> : vector<8x16xf32>
    %8 = tpu.matmul %7, %5, %cst_10 {dimension_numbers = #tpu.dot_dimension_numbers<[1], [0], [0], [1], [0, 0, 1, 1], [], []>} : vector<8x4xf32>, vector<4x16xf32>, vector<8x16xf32> -> vector<8x16xf32>
    %9 = vector.extract_strided_slice %4 {offsets = [0, 0], sizes = [4, 16], strides = [1, 1]} : vector<8x16xf32> to vector<4x16xf32>
    %c1 = arith.constant 1 : index
    %c0_11 = arith.constant 0 : index
    %c0_12 = arith.constant 0 : index
    %10 = vector.load %arg2[%c1, %c0_11, %c0_12] : memref<2x8x4xf32, #tpu.memory_space<vmem>>, vector<1x8x4xf32>
    %11 = vector.shape_cast %10 : vector<1x8x4xf32> to vector<8x4xf32>
    %cst_13 = arith.constant dense<0.000000e+00> : vector<8x16xf32>
    %12 = tpu.matmul %11, %9, %cst_13 {dimension_numbers = #tpu.dot_dimension_numbers<[1], [0], [0], [1], [0, 0, 1, 1], [], []>} : vector<8x4xf32>, vector<4x16xf32>, vector<8x16xf32> -> vector<8x16xf32>
    %13 = arith.addf %8, %12 : vector<8x16xf32>
    %14 = vector.broadcast %2 : vector<8x1xf32> to vector<8x16xf32>
    %15 = arith.addf %13, %14 : vector<8x16xf32>
    %cst_14 = arith.constant 0.000000e+00 : f32
    %16 = vector.broadcast %cst_14 : f32 to vector<8x16xf32>
    %17 = arith.maximumf %15, %16 : vector<8x16xf32>
    %cst_15 = arith.constant dense<0.000000e+00> : vector<1x16xf32>
    %18 = tpu.matmul %3, %17, %cst_15 {dimension_numbers = #tpu.dot_dimension_numbers<[1], [0], [0], [1], [0, 0, 1, 1], [], []>} : vector<1x8xf32>, vector<8x16xf32>, vector<1x16xf32> -> vector<1x16xf32>
    %19 = vector.extract_strided_slice %1 {offsets = [4, 0], sizes = [4, 16], strides = [1, 1]} : vector<8x16xf32> to vector<4x16xf32>
    %c0_16 = arith.constant 0 : index
    %c0_17 = arith.constant 0 : index
    %c0_18 = arith.constant 0 : index
    %20 = vector.load %arg2[%c0_16, %c0_17, %c0_18] : memref<2x8x4xf32, #tpu.memory_space<vmem>>, vector<1x8x4xf32>
    %21 = vector.shape_cast %20 : vector<1x8x4xf32> to vector<8x4xf32>
    %cst_19 = arith.constant dense<0.000000e+00> : vector<8x16xf32>
    %22 = tpu.matmul %21, %19, %cst_19 {dimension_numbers = #tpu.dot_dimension_numbers<[1], [0], [0], [1], [0, 0, 1, 1], [], []>} : vector<8x4xf32>, vector<4x16xf32>, vector<8x16xf32> -> vector<8x16xf32>
    %23 = vector.extract_strided_slice %4 {offsets = [4, 0], sizes = [4, 16], strides = [1, 1]} : vector<8x16xf32> to vector<4x16xf32>
    %c1_20 = arith.constant 1 : index
    %c0_21 = arith.constant 0 : index
    %c0_22 = arith.constant 0 : index
    %24 = vector.load %arg2[%c1_20, %c0_21, %c0_22] : memref<2x8x4xf32, #tpu.memory_space<vmem>>, vector<1x8x4xf32>
    %25 = vector.shape_cast %24 : vector<1x8x4xf32> to vector<8x4xf32>
    %cst_23 = arith.constant dense<0.000000e+00> : vector<8x16xf32>
    %26 = tpu.matmul %25, %23, %cst_23 {dimension_numbers = #tpu.dot_dimension_numbers<[1], [0], [0], [1], [0, 0, 1, 1], [], []>} : vector<8x4xf32>, vector<4x16xf32>, vector<8x16xf32> -> vector<8x16xf32>
    %27 = arith.addf %22, %26 : vector<8x16xf32>
    %28 = vector.broadcast %2 : vector<8x1xf32> to vector<8x16xf32>
    %29 = arith.addf %27, %28 : vector<8x16xf32>
    %cst_24 = arith.constant 0.000000e+00 : f32
    %30 = vector.broadcast %cst_24 : f32 to vector<8x16xf32>
    %31 = arith.maximumf %29, %30 : vector<8x16xf32>
    %cst_25 = arith.constant dense<0.000000e+00> : vector<1x16xf32>
    %32 = tpu.matmul %3, %31, %cst_25 {dimension_numbers = #tpu.dot_dimension_numbers<[1], [0], [0], [1], [0, 0, 1, 1], [], []>} : vector<1x8xf32>, vector<8x16xf32>, vector<1x16xf32> -> vector<1x16xf32>
    %33 = tpu.concatenate %17, %31 in 0 : vector<8x16xf32>, vector<8x16xf32> -> vector<16x16xf32>
    %c8 = arith.constant 8 : index
    %c0_26 = arith.constant 0 : index
    %34 = vector.load %arg5[%c8, %c0_26] : memref<24x1xf32, #tpu.memory_space<vmem>>, vector<8x1xf32>
    %c1_27 = arith.constant 1 : index
    %c0_28 = arith.constant 0 : index
    %35 = vector.load %arg6[%c1_27, %c0_28] : memref<3x8xf32, #tpu.memory_space<vmem>>, vector<1x8xf32>
    %cst_29 = arith.constant dense<0.000000e+00> : vector<16x16xf32>
    %36 = tpu.matmul %33, %0, %cst_29 {dimension_numbers = #tpu.dot_dimension_numbers<[1], [0], [0], [1], [0, 0, 1, 1], [], []>} : vector<16x16xf32>, vector<16x16xf32>, vector<16x16xf32> -> vector<16x16xf32>
    %37 = vector.extract_strided_slice %33 {offsets = [0, 0], sizes = [8, 16], strides = [1, 1]} : vector<16x16xf32> to vector<8x16xf32>
    %c0_30 = arith.constant 0 : index
    %c0_31 = arith.constant 0 : index
    %c0_32 = arith.constant 0 : index
    %38 = vector.load %arg3[%c0_30, %c0_31, %c0_32] : memref<2x8x8xf32, #tpu.memory_space<vmem>>, vector<1x8x8xf32>
    %39 = vector.shape_cast %38 : vector<1x8x8xf32> to vector<8x8xf32>
    %cst_33 = arith.constant dense<0.000000e+00> : vector<8x16xf32>
    %40 = tpu.matmul %39, %37, %cst_33 {dimension_numbers = #tpu.dot_dimension_numbers<[1], [0], [0], [1], [0, 0, 1, 1], [], []>} : vector<8x8xf32>, vector<8x16xf32>, vector<8x16xf32> -> vector<8x16xf32>
    %41 = vector.extract_strided_slice %36 {offsets = [0, 0], sizes = [8, 16], strides = [1, 1]} : vector<16x16xf32> to vector<8x16xf32>
    %c1_34 = arith.constant 1 : index
    %c0_35 = arith.constant 0 : index
    %c0_36 = arith.constant 0 : index
    %42 = vector.load %arg3[%c1_34, %c0_35, %c0_36] : memref<2x8x8xf32, #tpu.memory_space<vmem>>, vector<1x8x8xf32>
    %43 = vector.shape_cast %42 : vector<1x8x8xf32> to vector<8x8xf32>
    %cst_37 = arith.constant dense<0.000000e+00> : vector<8x16xf32>
    %44 = tpu.matmul %43, %41, %cst_37 {dimension_numbers = #tpu.dot_dimension_numbers<[1], [0], [0], [1], [0, 0, 1, 1], [], []>} : vector<8x8xf32>, vector<8x16xf32>, vector<8x16xf32> -> vector<8x16xf32>
    %45 = arith.addf %40, %44 : vector<8x16xf32>
    %46 = vector.broadcast %34 : vector<8x1xf32> to vector<8x16xf32>
    %47 = arith.addf %45, %46 : vector<8x16xf32>
    %cst_38 = arith.constant 0.000000e+00 : f32
    %48 = vector.broadcast %cst_38 : f32 to vector<8x16xf32>
    %49 = arith.maximumf %47, %48 : vector<8x16xf32>
    %cst_39 = arith.constant dense<0.000000e+00> : vector<1x16xf32>
    %50 = tpu.matmul %35, %49, %cst_39 {dimension_numbers = #tpu.dot_dimension_numbers<[1], [0], [0], [1], [0, 0, 1, 1], [], []>} : vector<1x8xf32>, vector<8x16xf32>, vector<1x16xf32> -> vector<1x16xf32>
    %51 = arith.addf %18, %50 : vector<1x16xf32>
    %52 = vector.extract_strided_slice %33 {offsets = [8, 0], sizes = [8, 16], strides = [1, 1]} : vector<16x16xf32> to vector<8x16xf32>
    %c0_40 = arith.constant 0 : index
    %c0_41 = arith.constant 0 : index
    %c0_42 = arith.constant 0 : index
    %53 = vector.load %arg3[%c0_40, %c0_41, %c0_42] : memref<2x8x8xf32, #tpu.memory_space<vmem>>, vector<1x8x8xf32>
    %54 = vector.shape_cast %53 : vector<1x8x8xf32> to vector<8x8xf32>
    %cst_43 = arith.constant dense<0.000000e+00> : vector<8x16xf32>
    %55 = tpu.matmul %54, %52, %cst_43 {dimension_numbers = #tpu.dot_dimension_numbers<[1], [0], [0], [1], [0, 0, 1, 1], [], []>} : vector<8x8xf32>, vector<8x16xf32>, vector<8x16xf32> -> vector<8x16xf32>
    %56 = vector.extract_strided_slice %36 {offsets = [8, 0], sizes = [8, 16], strides = [1, 1]} : vector<16x16xf32> to vector<8x16xf32>
    %c1_44 = arith.constant 1 : index
    %c0_45 = arith.constant 0 : index
    %c0_46 = arith.constant 0 : index
    %57 = vector.load %arg3[%c1_44, %c0_45, %c0_46] : memref<2x8x8xf32, #tpu.memory_space<vmem>>, vector<1x8x8xf32>
    %58 = vector.shape_cast %57 : vector<1x8x8xf32> to vector<8x8xf32>
    %cst_47 = arith.constant dense<0.000000e+00> : vector<8x16xf32>
    %59 = tpu.matmul %58, %56, %cst_47 {dimension_numbers = #tpu.dot_dimension_numbers<[1], [0], [0], [1], [0, 0, 1, 1], [], []>} : vector<8x8xf32>, vector<8x16xf32>, vector<8x16xf32> -> vector<8x16xf32>
    %60 = arith.addf %55, %59 : vector<8x16xf32>
    %61 = vector.broadcast %34 : vector<8x1xf32> to vector<8x16xf32>
    %62 = arith.addf %60, %61 : vector<8x16xf32>
    %cst_48 = arith.constant 0.000000e+00 : f32
    %63 = vector.broadcast %cst_48 : f32 to vector<8x16xf32>
    %64 = arith.maximumf %62, %63 : vector<8x16xf32>
    %cst_49 = arith.constant dense<0.000000e+00> : vector<1x16xf32>
    %65 = tpu.matmul %35, %64, %cst_49 {dimension_numbers = #tpu.dot_dimension_numbers<[1], [0], [0], [1], [0, 0, 1, 1], [], []>} : vector<1x8xf32>, vector<8x16xf32>, vector<1x16xf32> -> vector<1x16xf32>
    %66 = arith.addf %32, %65 : vector<1x16xf32>
    %67 = tpu.concatenate %49, %64 in 0 : vector<8x16xf32>, vector<8x16xf32> -> vector<16x16xf32>
    %c16 = arith.constant 16 : index
    %c0_50 = arith.constant 0 : index
    %68 = vector.load %arg5[%c16, %c0_50] : memref<24x1xf32, #tpu.memory_space<vmem>>, vector<8x1xf32>
    %c2 = arith.constant 2 : index
    %c0_51 = arith.constant 0 : index
    %69 = vector.load %arg6[%c2, %c0_51] : memref<3x8xf32, #tpu.memory_space<vmem>>, vector<1x8xf32>
    %cst_52 = arith.constant dense<0.000000e+00> : vector<16x16xf32>
    %70 = tpu.matmul %67, %0, %cst_52 {dimension_numbers = #tpu.dot_dimension_numbers<[1], [0], [0], [1], [0, 0, 1, 1], [], []>} : vector<16x16xf32>, vector<16x16xf32>, vector<16x16xf32> -> vector<16x16xf32>
    %71 = vector.extract_strided_slice %67 {offsets = [0, 0], sizes = [8, 16], strides = [1, 1]} : vector<16x16xf32> to vector<8x16xf32>
    %c0_53 = arith.constant 0 : index
    %c0_54 = arith.constant 0 : index
    %c0_55 = arith.constant 0 : index
    %72 = vector.load %arg4[%c0_53, %c0_54, %c0_55] : memref<2x8x8xf32, #tpu.memory_space<vmem>>, vector<1x8x8xf32>
    %73 = vector.shape_cast %72 : vector<1x8x8xf32> to vector<8x8xf32>
    %cst_56 = arith.constant dense<0.000000e+00> : vector<8x16xf32>
    %74 = tpu.matmul %73, %71, %cst_56 {dimension_numbers = #tpu.dot_dimension_numbers<[1], [0], [0], [1], [0, 0, 1, 1], [], []>} : vector<8x8xf32>, vector<8x16xf32>, vector<8x16xf32> -> vector<8x16xf32>
    %75 = vector.extract_strided_slice %70 {offsets = [0, 0], sizes = [8, 16], strides = [1, 1]} : vector<16x16xf32> to vector<8x16xf32>
    %c1_57 = arith.constant 1 : index
    %c0_58 = arith.constant 0 : index
    %c0_59 = arith.constant 0 : index
    %76 = vector.load %arg4[%c1_57, %c0_58, %c0_59] : memref<2x8x8xf32, #tpu.memory_space<vmem>>, vector<1x8x8xf32>
    %77 = vector.shape_cast %76 : vector<1x8x8xf32> to vector<8x8xf32>
    %cst_60 = arith.constant dense<0.000000e+00> : vector<8x16xf32>
    %78 = tpu.matmul %77, %75, %cst_60 {dimension_numbers = #tpu.dot_dimension_numbers<[1], [0], [0], [1], [0, 0, 1, 1], [], []>} : vector<8x8xf32>, vector<8x16xf32>, vector<8x16xf32> -> vector<8x16xf32>
    %79 = arith.addf %74, %78 : vector<8x16xf32>
    %80 = vector.broadcast %68 : vector<8x1xf32> to vector<8x16xf32>
    %81 = arith.addf %79, %80 : vector<8x16xf32>
    %cst_61 = arith.constant 0.000000e+00 : f32
    %82 = vector.broadcast %cst_61 : f32 to vector<8x16xf32>
    %83 = arith.maximumf %81, %82 : vector<8x16xf32>
    %cst_62 = arith.constant dense<0.000000e+00> : vector<1x16xf32>
    %84 = tpu.matmul %69, %83, %cst_62 {dimension_numbers = #tpu.dot_dimension_numbers<[1], [0], [0], [1], [0, 0, 1, 1], [], []>} : vector<1x8xf32>, vector<8x16xf32>, vector<1x16xf32> -> vector<1x16xf32>
    %85 = arith.addf %51, %84 : vector<1x16xf32>
    %86 = vector.extract_strided_slice %67 {offsets = [8, 0], sizes = [8, 16], strides = [1, 1]} : vector<16x16xf32> to vector<8x16xf32>
    %c0_63 = arith.constant 0 : index
    %c0_64 = arith.constant 0 : index
    %c0_65 = arith.constant 0 : index
    %87 = vector.load %arg4[%c0_63, %c0_64, %c0_65] : memref<2x8x8xf32, #tpu.memory_space<vmem>>, vector<1x8x8xf32>
    %88 = vector.shape_cast %87 : vector<1x8x8xf32> to vector<8x8xf32>
    %cst_66 = arith.constant dense<0.000000e+00> : vector<8x16xf32>
    %89 = tpu.matmul %88, %86, %cst_66 {dimension_numbers = #tpu.dot_dimension_numbers<[1], [0], [0], [1], [0, 0, 1, 1], [], []>} : vector<8x8xf32>, vector<8x16xf32>, vector<8x16xf32> -> vector<8x16xf32>
    %90 = vector.extract_strided_slice %70 {offsets = [8, 0], sizes = [8, 16], strides = [1, 1]} : vector<16x16xf32> to vector<8x16xf32>
    %c1_67 = arith.constant 1 : index
    %c0_68 = arith.constant 0 : index
    %c0_69 = arith.constant 0 : index
    %91 = vector.load %arg4[%c1_67, %c0_68, %c0_69] : memref<2x8x8xf32, #tpu.memory_space<vmem>>, vector<1x8x8xf32>
    %92 = vector.shape_cast %91 : vector<1x8x8xf32> to vector<8x8xf32>
    %cst_70 = arith.constant dense<0.000000e+00> : vector<8x16xf32>
    %93 = tpu.matmul %92, %90, %cst_70 {dimension_numbers = #tpu.dot_dimension_numbers<[1], [0], [0], [1], [0, 0, 1, 1], [], []>} : vector<8x8xf32>, vector<8x16xf32>, vector<8x16xf32> -> vector<8x16xf32>
    %94 = arith.addf %89, %93 : vector<8x16xf32>
    %95 = vector.broadcast %68 : vector<8x1xf32> to vector<8x16xf32>
    %96 = arith.addf %94, %95 : vector<8x16xf32>
    %cst_71 = arith.constant 0.000000e+00 : f32
    %97 = vector.broadcast %cst_71 : f32 to vector<8x16xf32>
    %98 = arith.maximumf %96, %97 : vector<8x16xf32>
    %cst_72 = arith.constant dense<0.000000e+00> : vector<1x16xf32>
    %99 = tpu.matmul %69, %98, %cst_72 {dimension_numbers = #tpu.dot_dimension_numbers<[1], [0], [0], [1], [0, 0, 1, 1], [], []>} : vector<1x8xf32>, vector<8x16xf32>, vector<1x16xf32> -> vector<1x16xf32>
    %100 = arith.addf %66, %99 : vector<1x16xf32>
    %101 = tpu.concatenate %85, %100 in 0 : vector<1x16xf32>, vector<1x16xf32> -> vector<2x16xf32>
    %c0_73 = arith.constant 0 : index
    %c0_74 = arith.constant 0 : index
    %102 = vector.load %arg7[%c0_73, %c0_74] : memref<16x6xf32, #tpu.memory_space<vmem>>, vector<16x6xf32>
    %cst_75 = arith.constant dense<0.000000e+00> : vector<2x6xf32>
    %103 = tpu.matmul %101, %102, %cst_75 {dimension_numbers = #tpu.dot_dimension_numbers<[1], [0], [0], [1], [0, 0, 1, 1], [], []>} : vector<2x16xf32>, vector<16x6xf32>, vector<2x6xf32> -> vector<2x6xf32>
    %c0_76 = arith.constant 0 : index
    %c0_77 = arith.constant 0 : index
    %104 = vector.load %arg8[%c0_76, %c0_77] : memref<6x16xf32, #tpu.memory_space<vmem>>, vector<6x16xf32>
    %cst_78 = arith.constant dense<0.000000e+00> : vector<2x16xf32>
    %105 = tpu.matmul %103, %104, %cst_78 {dimension_numbers = #tpu.dot_dimension_numbers<[1], [0], [0], [1], [0, 0, 1, 1], [], []>} : vector<2x6xf32>, vector<6x16xf32>, vector<2x16xf32> -> vector<2x16xf32>
    %c0_79 = arith.constant 0 : index
    %c0_80 = arith.constant 0 : index
    %106 = vector.load %arg9[%c0_79, %c0_80] : memref<1x16xf32, #tpu.memory_space<vmem>>, vector<1x16xf32>
    %107 = vector.broadcast %106 : vector<1x16xf32> to vector<2x16xf32>
    %108 = arith.addf %105, %107 : vector<2x16xf32>
    %cst_81 = arith.constant 0.000000e+00 : f32
    %109 = vector.broadcast %cst_81 : f32 to vector<2x16xf32>
    %110 = arith.maximumf %108, %109 : vector<2x16xf32>
    %c0_82 = arith.constant 0 : index
    %c0_83 = arith.constant 0 : index
    %111 = vector.load %arg10[%c0_82, %c0_83] : memref<16x3xf32, #tpu.memory_space<vmem>>, vector<16x3xf32>
    %cst_84 = arith.constant dense<0.000000e+00> : vector<2x3xf32>
    %112 = tpu.matmul %110, %111, %cst_84 {dimension_numbers = #tpu.dot_dimension_numbers<[1], [0], [0], [1], [0, 0, 1, 1], [], []>} : vector<2x16xf32>, vector<16x3xf32>, vector<2x3xf32> -> vector<2x3xf32>
    %c0_85 = arith.constant 0 : index
    %c0_86 = arith.constant 0 : index
    %113 = vector.load %arg11[%c0_85, %c0_86] : memref<1x3xf32, #tpu.memory_space<vmem>>, vector<1x3xf32>
    %114 = vector.broadcast %113 : vector<1x3xf32> to vector<2x3xf32>
    %115 = arith.addf %112, %114 : vector<2x3xf32>
    %cst_87 = arith.constant dense<0xFF800000> : vector<2xf32>
    %116 = vector.multi_reduction <maximumf>, %115, %cst_87 [1] : vector<2x3xf32> to vector<2xf32>
    %117 = vector.shape_cast %116 : vector<2xf32> to vector<2x1xf32>
    %118 = vector.broadcast %117 : vector<2x1xf32> to vector<2x3xf32>
    %119 = arith.subf %115, %118 : vector<2x3xf32>
    %120 = math.exp %119 : vector<2x3xf32>
    %cst_88 = arith.constant dense<0.000000e+00> : vector<2xf32>
    %121 = vector.multi_reduction <add>, %120, %cst_88 [1] : vector<2x3xf32> to vector<2xf32>
    %122 = vector.shape_cast %121 : vector<2xf32> to vector<2x1xf32>
    %123 = math.log %122 : vector<2x1xf32>
    %124 = vector.broadcast %123 : vector<2x1xf32> to vector<2x3xf32>
    %125 = arith.subf %119, %124 : vector<2x3xf32>
    %c0_89 = arith.constant 0 : index
    %c0_90 = arith.constant 0 : index
    %126 = vector.load %arg12[%c0_89, %c0_90] : memref<2x3xf32, #tpu.memory_space<vmem>>, vector<2x3xf32>
    tpu.vector_store %arg12[%c0_89, %c0_90], %125 {strides = array<i32>} : memref<2x3xf32, #tpu.memory_space<vmem>>, vector<2x3xf32>,
    return
  }
}

</mosaic_0001>

<bundles_post_ra>
// kernel: tpu_custom_call.1
= control target key start
LH: loop header
LB: loop body
LE: loop exit
PB: predicated region body
PF: predicated region fallthrough
CT: control target
= control target key end

     0   :  { %v2184_v2 = vmov 0.0|0.0   ;;  %vm2185_vm0 = vmmov 0   ;;  %v2186_v4 = vmov 0.0   ;;  %s2437_s0 = inlined_call_operand.vmem [shape: f32[8,16], index: 0, kind: input, shape index: {}]   ;;  %s2438_s1 = inlined_call_operand.vmem [shape: f32[16,16], index: 1, kind: input, shape index: {}]   ;;  %s2439_s2 = inlined_call_operand.vmem [shape: f32[2,8,4], index: 2, kind: input, shape index: {}]   ;;  %s2440_s3 = inlined_call_operand.vmem [shape: f32[2,8,8], index: 3, kind: input, shape index: {}]   ;;  %s2441_s4 = inlined_call_operand.vmem [shape: f32[2,8,8], index: 4, kind: input, shape index: {}]   ;;  %s2442_s5 = inlined_call_operand.vmem [shape: f32[24,1], index: 5, kind: input, shape index: {}]   ;;  %s2443_s6 = inlined_call_operand.vmem [shape: f32[3,8], index: 6, kind: input, shape index: {}]   ;;  %s2444_s7 = inlined_call_operand.vmem [shape: f32[16,6], index: 7, kind: input, shape index: {}]   ;;  %s2445_s8 = inlined_call_operand.vmem [shape: f32[6,16], index: 8, kind: input, shape index: {}]   ;;  %s2446_s9 = inlined_call_operand.vmem [shape: f32[1,16], index: 9, kind: input, shape index: {}]   ;;  %s2447_s10 = inlined_call_operand.vmem [shape: f32[16,3], index: 10, kind: input, shape index: {}]   ;;  %s2448_s11 = inlined_call_operand.vmem [shape: f32[1,3], index: 11, kind: input, shape index: {}]   ;;  %s2449_s12 = inlined_call_operand.hbm [shape: f32[2,3], index: 12, kind: output, shape index: {}]  }
   0x1   :  { %v42_v0 = vld [vmem:[%s2438_s1] sm:$0xff]  ;;  %v43_v1 = vld [vmem:[%s2438_s1 + $0x8] sm:$0xff]  ;;  %2124 = vmatprep.subr.bf16.mxu0 %v2184_v2  ;;  %1998 = vmatprep.mubr.msk.f32.mxu0 %vm2185_vm0, %v2186_v4 }
   0x2   :  { %v2261_v3 = vpack.c.bf16 %v43_v1, %v42_v0 }
   0x3   :  { %17 = vsyncpa [#allocation3], 0  ;;  %2001 = vmatprep.subr.mxu1 %v2186_v4  ;;  %2003 = vmatprep.mubr.msk.f32.mxu1 %vm2185_vm0, %v2186_v4  ;;  %v44_v5 = vld [vmem:[%s2437_s0] sm:$0xff]  ;;  %vm47_vm1 = vcmask 130048   ;;  %v2187_v7 = vmov 0   ;;  %v432_v8 = vld [vmem:[%s2442_s5 + $0x8] sm:$0xff] }
   0x4   :  { %2126 = vmatpush3.bf16.msra.mxu0 %v2261_v3  ;;  %v45_v6 = vld [vmem:[%s2442_s5] sm:$0xff]  ;;  %2154 = vset.pattern.permute.xlu0 %v2187_v7  ;;  %vm128_vm2 = vcmask 1043456   ;;  %v1904_v9 = vld [vmem:[%s2439_s2 + $0x8] sm:$0xff]  ;;  %vm124_vm3 = vcmask 31744   ;;  %v357_v13 = vrot.slane %v44_v5, 4  ;;  %vm518_vm4 = vcmask 64512  }
   0x5   :  { %2011 = vmatprep.subr.mxu0 %v2186_v4  ;;  %2155 = vset.pattern.permute.xlu1 %v2187_v7  ;;  %v121_v14 = vld [vmem:[%s2439_s2] sm:$0xff]  ;;  %v1915_v31 = vld [vmem:[%s2440_s3 + $0x8] sm:$0xff]  ;;  %v1100_v52 = vld [vmem:[%s2442_s5 + $0x10] sm:$0xff]  ;;  %vm1629_vm5 = vcmask 1040384   ;;  %vm1718_vm6 = vcmask 1045504   ;;  %vm1714_vm7 = vcmask 48128  }
   0x6   :  { %279 = vperm.xlu0 %2154, %v45_v6   ;;  %v515_v30 = vld [vmem:[%s2440_s3] sm:$0xff]  ;;  %1334 = vperm.xlu1 %2155, %v1100_v52   ;;  %v1926_v54 = vld [vmem:[%s2441_s4 + $0x8] sm:$0xff]  ;;  %vm1875_vm8 = vcmask 17408  }
   0x7   :  { %1999 = vmatmul.mubr.msk.f32.vlgmr.msra.gmra.mrb[0].mxu0 %vm47_vm1, %v44_v5  ;;  %v433_v47 = vld [vmem:[%s2443_s6 + $0x1] sm:$0x1]  ;;  %v46_v50 = vld [vmem:[%s2443_s6] sm:$0x1] }
   0x8   :  { %2013 = vmatprep.mubr.msk.f32.mxu0 %vm2185_vm0, %v2186_v4  ;;  %v1183_v51 = vld [vmem:[%s2441_s4] sm:$0xff] }
   0xa   :  { %667 = vperm.xlu0 %2154, %v432_v8  }
  0x85   :  { %v280_v17 = vpop.permute.xlu0 %279  ;;  %v1335_v59 = vpop.permute.xlu1 %1334 }
  0x89   :  { %v668_v41 = vpop.permute.xlu0 %667 }
  0xda   :  { %v117_v10 = vpop.f32.mrb[0].mxu0 }
  0xdb   :  { %v284_v11 = vrot.slane %v117_v10, 4  ;;  %v2000_v12 = vpop.f32.mrb[1].mxu0  ;;  %2002 = vmatpush3.msk.msra.mxu1 %vm128_vm2, %v117_v10  ;;  %v1631_v10 = vld [vmem:[%s2444_s7] sm:$0xff] }
  0xdc   :  { %2004 = vmatmul.mubr.msk.f32.vlgmr.msra.gmra.mrb[0].mxu1 %vm124_vm3, %v1904_v9  ;;  %2006 = vmatprep.subr.mxu1 %v2186_v4 }
  0xdd   :  { %2012 = vmatpush3.msk.msra.mxu0 %vm128_vm2, %v284_v11  ;;  %2007 = vmatpush3.msk.msra.mxu1 %vm128_vm2, %v44_v5  ;;  %v1632_v11 = vld [vmem:[%s2444_s7 + $0x8] sm:$0xff] }
  0xde   :  { %2008 = vmatprep.mubr.msk.f32.mxu1 %vm2185_vm0, %v2186_v4  ;;  %2016 = vmatprep.subr.mxu1 %v2186_v4  ;;  %v2136_v12 = vpack.c.bf16 %v1632_v11, %v1631_v10 }
  0xdf   :  { %2014 = vmatmul.mubr.msk.f32.vlgmr.msra.gmra.mrb[2].mxu0 %vm124_vm3, %v1904_v9  ;;  %2128 = vmatprep.subr.bf16.mxu0 %v2261_v3 }
  0xe0   :  { %2009 = vmatmul.mubr.msk.f32.vlgmr.msra.gmra.mrb[2].mxu1 %vm124_vm3, %v121_v14  ;;  %2130 = vmatpush3.bf16.msra.mxu0 %v2261_v3 }
  0xe1   :  { %2017 = vmatpush3.msk.msra.mxu1 %vm128_vm2, %v357_v13  ;;  %2018 = vmatprep.mubr.msk.f32.mxu1 %vm2185_vm0, %v2186_v4 }
  0xe2   :  { %2033 = vmatprep.subr.mxu0 %v2186_v4  ;;  %2028 = vmatprep.subr.mxu1 %v2186_v4 }
  0xe4   :  { %2019 = vmatmul.mubr.msk.f32.vlgmr.msra.gmra.mrb[4].mxu1 %vm124_vm3, %v121_v14 }
  0xe5   :  { %2030 = vmatprep.mubr.msk.f32.mxu1 %vm2185_vm0, %v2186_v4 }
 0x1af   :  { %v198_v15 = vpop.f32.mrb[0].mxu1 }
 0x1b0   :  { %v2005_v16 = vpop.f32.mrb[1].mxu1 }
 0x1b2   :  { %v353_v18 = vpop.f32.mrb[2].mxu0 }
 0x1b3   :  { %v273_v19 = vpop.f32.mrb[2].mxu1  ;;  %v2015_v20 = vpop.f32.mrb[3].mxu0 }
 0x1b4   :  { %v274_v21 = vadd.f32 %v273_v19, %v198_v15  ;;  %v2010_v22 = vpop.f32.mrb[3].mxu1  ;;  %v1706_v19 = vld [vmem:[%s2445_s8] sm:$0x3f] }
 0x1b5   :  { %v1794_v22 = vld [vmem:[%s2447_s10 + $0x8] sm:$0xff] }
 0x1b6   :  { %v282_v23 = vadd.f32 %v280_v17, %v274_v21  ;;  %v1793_v21 = vld [vmem:[%s2447_s10] sm:$0xff] }
 0x1b7   :  { %v426_v24 = vpop.f32.mrb[4].mxu1 }
 0x1b8   :  { %v283_v25 = vmax.f32 %v282_v23, 0.0  ;;  %v427_v26 = vadd.f32 %v426_v24, %v353_v18  ;;  %v2020_v27 = vpop.f32.mrb[5].mxu1  ;;  %v2139_v23 = vpack.c.bf16 %v1794_v22, %v1793_v21 }
 0x1ba   :  { %v430_v28 = vadd.f32 %v427_v26, %v280_v17  ;;  %2025 = vmatprep.mubr.msk.f32.mxu0 %vm47_vm1, %v283_v25 }
 0x1bc   :  { %v431_v29 = vmax.f32 %v430_v28, 0.0  ;;  %v1937_v28 = vld [vmem:[%s2448_s11] ss:$0 sm:$0xff] }
 0x1be   :  { %2026 = vmatmul.mubr.msk.f32.vlgmr.msra.gmra.mrb[4].mxu0 %vm47_vm1, %v431_v29 }
 0x1bf   :  { %2034 = vmatpush3.msra.mxu0 %v283_v25  ;;  %2035 = vmatprep.mubr.msk.f32.mxu0 %vm2185_vm0, %v2186_v4 }
 0x1c0   :  { %2048 = vmatprep.subr.mxu0 %v2186_v4 }
 0x1c2   :  { %2036 = vmatmul.mubr.msk.f32.vlgmr.msra.gmra.mrb[6].mxu0 %vm518_vm4, %v515_v30 }
 0x1c3   :  { %2050 = vmatprep.mubr.msk.f32.mxu0 %vm2185_vm0, %v2186_v4 }
 0x291   :  { %v2027_v32 = vpop.f32.mrb[4].mxu0 }
 0x292   :  { %v506_v33 = vpop.f32.mrb[5].mxu0  ;;  %2049 = vmatpush3.msra.mxu0 %v2027_v32 }
 0x293   :  { %2029 = vmatpush3.msra.mxu1 %v506_v33  ;;  %2051 = vmatmul.mubr.msk.f32.vlgmr.msra.gmra.mrb[8].mxu0 %vm518_vm4, %v1915_v31 }
 0x294   :  { %2053 = vmatprep.subr.mxu0 %v2186_v4  ;;  %2031 = vmatmul.mubr.msk.f32.vlgmr.msra.gmra.mrb[6].mxu1 %vm518_vm4, %v1915_v31 }
 0x295   :  { %2054 = vmatpush3.msra.mxu0 %v431_v29  ;;  %2055 = vmatprep.mubr.msk.f32.mxu0 %vm2185_vm0, %v2186_v4  ;;  %v661_v34 = vpop.f32.mrb[6].mxu0 }
 0x296   :  { %v2037_v35 = vpop.f32.mrb[7].mxu0  ;;  %2038 = vmatprep.subr.mxu1 %v2186_v4  ;;  %2132 = vmatprep.subr.bf16.mxu0 %v2261_v3 }
 0x297   :  { %2056 = vmatmul.mubr.msk.f32.vlgmr.msra.gmra.mrb[10].mxu0 %vm518_vm4, %v515_v30  ;;  %2040 = vmatprep.mubr.msk.f32.mxu1 %vm2185_vm0, %v2186_v4 }
 0x298   :  { %2134 = vmatpush3.bf16.msra.mxu0 %v2261_v3  ;;  %v1101_v3 = vld [vmem:[%s2443_s6 + $0x2] sm:$0x1] }
 0x299   :  { %2075 = vmatprep.subr.mxu0 %v2186_v4 }
 0x366   :  { %v884_v36 = vpop.f32.mrb[8].mxu0 }
 0x367   :  { %v588_v37 = vpop.f32.mrb[6].mxu1  ;;  %v2052_v38 = vpop.f32.mrb[9].mxu0 }
 0x368   :  { %v662_v39 = vadd.f32 %v661_v34, %v588_v37  ;;  %v2032_v40 = vpop.f32.mrb[7].mxu1 }
 0x36a   :  { %v670_v42 = vadd.f32 %v668_v41, %v662_v39  ;;  %v954_v43 = vpop.f32.mrb[10].mxu0 }
 0x36b   :  { %v955_v44 = vadd.f32 %v954_v43, %v884_v36  ;;  %v2057_v45 = vpop.f32.mrb[11].mxu0 }
 0x36c   :  { %v671_v46 = vmax.f32 %v670_v42, 0.0 }
 0x36d   :  { %v958_v48 = vadd.f32 %v955_v44, %v668_v41 }
 0x36e   :  { %2039 = vmatpush3.msra.mxu1 %v671_v46  ;;  %2072 = vmatprep.mubr.msk.f32.mxu0 %vm47_vm1, %v671_v46 }
 0x36f   :  { %v959_v49 = vmax.f32 %v958_v48, 0.0  ;;  %2041 = vmatmul.mubr.msk.f32.vlgmr.msra.gmra.mrb[8].mxu1 %vm518_vm4, %v433_v47  ;;  %2043 = vmatprep.subr.mxu1 %v2186_v4 }
 0x370   :  { %2044 = vmatpush3.msra.mxu1 %v283_v25  ;;  %2045 = vmatprep.mubr.msk.f32.mxu1 %vm2185_vm0, %v2186_v4 }
 0x371   :  { %2073 = vmatmul.mubr.msk.f32.vlgmr.msra.gmra.mrb[12].mxu0 %vm47_vm1, %v959_v49  ;;  %2058 = vmatprep.subr.mxu1 %v2186_v4 }
 0x372   :  { %2077 = vmatprep.mubr.msk.f32.mxu0 %vm2185_vm0, %v2186_v4 }
 0x377   :  { %2046 = vmatmul.mubr.msk.f32.vlgmr.msra.gmra.mrb[8].mxu1 %vm518_vm4, %v46_v50 }
 0x378   :  { %2059 = vmatpush3.msra.mxu1 %v959_v49  ;;  %2060 = vmatprep.mubr.msk.f32.mxu1 %vm2185_vm0, %v2186_v4 }
 0x379   :  { %2063 = vmatprep.subr.mxu1 %v2186_v4 }
 0x37b   :  { %2061 = vmatmul.mubr.msk.f32.vlgmr.msra.gmra.mrb[10].mxu1 %vm518_vm4, %v433_v47 }
 0x37c   :  { %2064 = vmatpush3.msra.mxu1 %v431_v29  ;;  %2065 = vmatprep.mubr.msk.f32.mxu1 %vm2185_vm0, %v2186_v4 }
 0x37d   :  { %2080 = vmatprep.subr.mxu1 %v2186_v4 }
 0x383   :  { %2066 = vmatmul.mubr.msk.f32.vlgmr.msra.gmra.mrb[10].mxu1 %vm518_vm4, %v46_v50 }
 0x384   :  { %2081 = vmatpush3.msra.mxu1 %v671_v46  ;;  %2082 = vmatprep.mubr.msk.f32.mxu1 %vm2185_vm0, %v2186_v4 }
 0x385   :  { %2085 = vmatprep.subr.mxu1 %v2186_v4 }
 0x387   :  { %2083 = vmatmul.mubr.msk.f32.vlgmr.msra.gmra.mrb[12].mxu1 %vm518_vm4, %v1183_v51 }
 0x388   :  { %2087 = vmatprep.mubr.msk.f32.mxu1 %vm2185_vm0, %v2186_v4 }
 0x444   :  { %v2074_v53 = vpop.f32.mrb[12].mxu0 }
 0x445   :  { %v1174_v55 = vpop.f32.mrb[13].mxu0 }
 0x446   :  { %2076 = vmatpush3.msra.mxu0 %v1174_v55 }
 0x447   :  { %2078 = vmatmul.mubr.msk.f32.vlgmr.msra.gmra.mrb[14].mxu0 %vm518_vm4, %v1926_v54  ;;  %2090 = vmatprep.subr.mxu0 %v2186_v4 }
 0x448   :  { %2091 = vmatpush3.msra.mxu0 %v2074_v53  ;;  %2092 = vmatprep.mubr.msk.f32.mxu0 %vm2185_vm0, %v2186_v4 }
 0x449   :  { %2095 = vmatprep.subr.mxu0 %v2186_v4 }
 0x44b   :  { %2093 = vmatmul.mubr.msk.f32.vlgmr.msra.gmra.mrb[16].mxu0 %vm518_vm4, %v1926_v54 }
 0x44c   :  { %2096 = vmatpush3.msra.mxu0 %v959_v49  ;;  %2097 = vmatprep.mubr.msk.f32.mxu0 %vm2185_vm0, %v2186_v4 }
 0x44d   :  { %2135 = vmatprep.subr.bf16.mxu0 %v2184_v2 }
 0x44f   :  { %2098 = vmatmul.mubr.msk.f32.vlgmr.msra.gmra.mrb[18].mxu0 %vm518_vm4, %v1183_v51 }
 0x450   :  { %2109 = vmatprep.mubr.msk.f32.mxu0 %vm2185_vm0, %v2186_v4  ;;  %2137 = vmatpush3.bf16.msra.mxu0 %v2136_v12 }
 0x451   :  { %2138 = vmatprep.subr.bf16.mxu0 %v2184_v2 }
 0x45a   :  { %v1328_v56 = vpop.f32.mrb[12].mxu1 }
 0x45b   :  { %v2084_v57 = vpop.f32.mrb[13].mxu1 }
 0x51a   :  { %v1255_v58 = vpop.f32.mrb[14].mxu0 }
 0x51b   :  { %v1329_v60 = vadd.f32 %v1328_v56, %v1255_v58  ;;  %v2079_v61 = vpop.f32.mrb[15].mxu0 }
 0x51d   :  { %v1337_v62 = vadd.f32 %v1335_v59, %v1329_v60 }
 0x51e   :  { %v1479_v63 = vpop.f32.mrb[16].mxu0 }
 0x51f   :  { %v1338_v0 = vmax.f32 %v1337_v62, 0.0  ;;  %v2094_v1 = vpop.f32.mrb[17].mxu0 }
 0x521   :  { %2086 = vmatpush3.msra.mxu1 %v1338_v0 }
 0x522   :  { %2088 = vmatmul.mubr.msk.f32.vlgmr.msra.gmra.mrb[8].mxu1 %vm518_vm4, %v1101_v3  ;;  %v1549_v5 = vpop.f32.mrb[18].mxu0  ;;  %2100 = vmatprep.subr.mxu1 %v2186_v4 }
 0x523   :  { %v1550_v6 = vadd.f32 %v1549_v5, %v1479_v63  ;;  %v2099_v7 = vpop.f32.mrb[19].mxu0  ;;  %2102 = vmatprep.mubr.msk.f32.mxu1 %vm2185_vm0, %v2186_v4 }
 0x525   :  { %v1553_v8 = vadd.f32 %v1550_v6, %v1335_v59 }
 0x527   :  { %v1554_v9 = vmax.f32 %v1553_v8, 0.0 }
 0x529   :  { %2101 = vmatpush3.msra.mxu1 %v1554_v9 }
 0x52a   :  { %2103 = vmatmul.mubr.msk.f32.vlgmr.msra.gmra.mrb[10].mxu1 %vm518_vm4, %v1101_v3  ;;  %2112 = vmatprep.subr.mxu1 %v2186_v4 }
 0x52b   :  { %2114 = vmatprep.mubr.msk.f32.mxu1 %vm2185_vm0, %v2186_v4  ;;  %2113 = vmatpush3.msk.msra.mxu1 %vm1718_vm6, %v1706_v19 }
 0x5f5   :  { %v1408_v13 = vpop.f32.mrb[8].mxu1 }
 0x5f6   :  { %v2089_v14 = vpop.f32.mrb[9].mxu1 }
 0x5fd   :  { %v1621_v15 = vpop.f32.mrb[10].mxu1 }
 0x5fe   :  { %v1627_v16 = vrot.slane %v1621_v15, 7  ;;  %v2104_v17 = vpop.f32.mrb[11].mxu1 }
 0x600   :  { %v1630_v18 = vsel %vm1629_vm5, %v1408_v13, %v1627_v16 }
 0x601   :  { %2110 = vmatmul.mubr.msk.f32.vlgmr.msra.gmra.mrb[20].mxu0 %vm47_vm1, %v1630_v18 }
 0x602   :  { %2121 = vmatprep.mubr.msk.f32.mxu0 %vm2185_vm0, %v2186_v4  ;;  %2140 = vmatpush3.bf16.msra.mxu0 %v2139_v23  ;;  %v1934_v4 = vld [vmem:[%s2446_s9] ss:$0 sm:$0xff]  ;;  %s2188_s9 = smov [#allocation2]  }
 0x603   :  { %s1895_s10 = sshll.u32 %s2188_s9, 4  ;;  %s1896_s10 = int_to_ptr.vmem [resolvable:$true] %s1895_s10 }
 0x604   :  { %s2160_s11 = scalar_lea.vmem %s1896_s10, 32  ;;  %p2165_p1 = scmp.lt.s32.totalorder %s1896_s10, %s1896_s10 }
 0x605   :  { %p2161_p0 = scmp.ne.s32.totalorder %s1896_s10, %s2160_s11  ;;  %p2166_p2 = scmp.lt.s32.totalorder %s2160_s11, %s2160_s11 }
 0x607   :  { %p2167_p3 = por %p2166_p2, %p2165_p1 }
 0x609   :  { %p2168_p4 = pnand %p2167_p3, %p2161_p0 }
 0x6d4   :  { %v1702_v2 = vpop.f32.mrb[20].mxu0 }
 0x6d5   :  { %v2111_v20 = vpop.f32.mrb[21].mxu0  ;;  %2115 = vmatmul.mubr.msk.f32.vlgmr.msra.gmra.mrb[14].mxu1 %vm1714_vm7, %v1702_v2 }
 0x7a8   :  { %v1788_v24 = vpop.f32.mrb[14].mxu1 }
 0x7a9   :  { %v1789_v25 = vadd.f32 %v1934_v4, %v1788_v24  ;;  %v2116_v26 = vpop.f32.mrb[15].mxu1 }
 0x7ab   :  { %v1792_v27 = vmax.f32 %v1789_v25, 0.0 }
 0x7ad   :  { %2122 = vmatmul.mubr.msk.f32.vlgmr.msra.gmra.mrb[22].mxu0 %vm47_vm1, %v1792_v27 }
 0x880   :  { %v1871_v29 = vpop.f32.mrb[22].mxu0 }
 0x881   :  { %v1872_v30 = vadd.f32 %v1937_v28, %v1871_v29  ;;  %v2123_v31 = vpop.f32.mrb[23].mxu0 }
 0x883   :  { %v1876_v32 = vsel %vm1875_vm8, %v1872_v30, -inf }
 0x884   :  { %1877 = vmax.xlane.f32.xlu1 %v1876_v32 }
 0x911   :  { %v1878_v33 = vpop.xlane.xlu1 %1877 }
 0x912   :  { %v1879_v34 = vsub.f32 %v1872_v30, %v1878_v33 }
 0x914   :  { %v1880_v35 = vmul.f32 1.442695, %v1879_v34 }
 0x916   :  { %2156 = vpow2.f32 %v1880_v35 }
 0x920   :  { %v2157_v36 = vpop.eup %2156 }
 0x921   :  { %v1882_v37 = vsel %vm1875_vm8, %v2157_v36, 0.0 }
 0x922   :  { %1883 = vadd.xlane.f32.xlu0 %v1882_v37 }
 0x9af   :  { %v1884_v38 = vpop.xlane.xlu0 %1883 }
 0x9b0   :  { %2158 = vlog2.f32 %v1884_v38 }
 0x9ba   :  { %v2159_v39 = vpop.eup %2158 }
 0x9bb   :  { %v1886_v40 = vmul.f32 0.6931472, %v2159_v39 }
 0x9bd   :  { %v1887_v41 = vsub.f32 %v1879_v34, %v1886_v40 }
 0x9bf   :  { %1888 = vst.msk [vmem:[#allocation2] sm:$0x3] %vm1875_vm8, %v1887_v41 }
 0x9c0   :  { %2171 = shalt.err (!%p2168_p4)
}
 0x9c1   :  { %s2172_s18 = scalar_lea.hbm %s2449_s12, 32 }
 0x9c2   :  { %p2173_p5 = scmp.ne.s32.totalorder %s2449_s12, %s2172_s18  ;;  %p2176_p6 = scmp.lt.u32.totalorder %s2172_s18, %s2449_s12 }
 0x9c4   :  { %p2178_p7 = pnand %p2176_p6, %p2173_p5 }
 0x9c6   :  { %2181 = shalt.err (!%p2178_p7)
}
 0x9c7   :  { %1898 = dma.vmem_to_hbm [thread:$0]  %s1896_s10, 32, %s2449_s12, [#allocation3]  }
 0x9c8   :  { %2182 = dma.done.wait [#allocation3], 32  }
 0x9c9   :  { %2183 = vsyncadd [#allocation3], 4294967264 }
 0x9ca   :  { %1902 = vsyncpa [#allocation3], 1 }

</bundles_post_ra>
